<compile_context>
chip_gen: v6e
topology: v6e:2x2x1
jax: 0.10.0
libtpu: 0.0.40
codegen_flags: <defaults>
</compile_context>

<pallas_src>
import functools

import jax
import jax.numpy as jnp
from jax.experimental import pallas as pl
from jax.experimental.pallas import tpu as pltpu


# ---------------------------------------------------------------------------
# Pallas kernels (channel-major: N on lanes)
# ---------------------------------------------------------------------------
def _levi_civita_overlap_kernel_t(
    n1, x1_l0_ref, x1_l1_ref, x2_l0_ref, x2_l1_ref, out_l0_ref, out_l1_ref
):
    """overlap_out=True path.

    x*_l0_ref : (n0, TILE_N)        scalar (l=0) channels
    x*_l1_ref : (3, n1, TILE_N)     l=1 channels, m-major on the leading dim
    out_l0_ref: (n0, TILE_N)
    out_l1_ref: (3, n1, TILE_N)
    """
    # l0 x l0 -> l0 (out_000).  out_110 intentionally NOT added: the reference
    # code's `.add(out_110)` is out-of-place and its result is discarded.
    out_l0_ref[...] = x1_l0_ref[...] * x2_l0_ref[...]

    s1 = x1_l0_ref[:n1, :]          # first n1 scalar channels of x1
    s2 = x2_l0_ref[:n1, :]          # first n1 scalar channels of x2
    a0, a1, a2 = x1_l1_ref[0], x1_l1_ref[1], x1_l1_ref[2]
    b0, b1, b2 = x2_l1_ref[0], x2_l1_ref[1], x2_l1_ref[2]

    # out_l1 = out_111 (cross) + out_101 + out_011 ; lane-dense full-width stores.
    out_l1_ref[0, :, :] = (a1 * b2 - a2 * b1) + s2 * a0 + s1 * b0
    out_l1_ref[1, :, :] = (a2 * b0 - a0 * b2) + s2 * a1 + s1 * b1
    out_l1_ref[2, :, :] = (a0 * b1 - a1 * b0) + s2 * a2 + s1 * b2


def _levi_civita_split_kernel_t(
    n1, x1_l0_ref, x1_l1_ref, x2_l0_ref, x2_l1_ref,
    out_000_ref, out_110_ref, out_l1_ref,
):
    """overlap_out=False path.

    out_000_ref: (n0, TILE_N)
    out_110_ref: (n1, TILE_N)
    out_l1_ref : (3, 3, n1, TILE_N)   axis0 = m, axis1 = (101, 011, 111)
    """
    out_000_ref[...] = x1_l0_ref[...] * x2_l0_ref[...]

    s1 = x1_l0_ref[:n1, :]
    s2 = x2_l0_ref[:n1, :]
    a = (x1_l1_ref[0], x1_l1_ref[1], x1_l1_ref[2])
    b = (x2_l1_ref[0], x2_l1_ref[1], x2_l1_ref[2])

    out_110_ref[...] = a[0] * b[0] + a[1] * b[1] + a[2] * b[2]

    cross = (
        a[1] * b[2] - a[2] * b[1],
        a[2] * b[0] - a[0] * b[2],
        a[0] * b[1] - a[1] * b[0],
    )
    for m in range(3):
        out_l1_ref[m, 0, :, :] = s2 * a[m]     # out_101
        out_l1_ref[m, 1, :, :] = s1 * b[m]     # out_011
        out_l1_ref[m, 2, :, :] = cross[m]      # out_111


# ---------------------------------------------------------------------------
# Tile sizing: budget ~12 MiB of double-buffered tiles (safe on v7x 64 MiB VMEM)
# ---------------------------------------------------------------------------
_VMEM_TILE_BUDGET = 12 * 1024 * 1024
_VMEM_LIMIT_BYTES = 32 * 1024 * 1024


def _pick_tile_n(n0, n1, N, itemsize, overlap_out):
    c_in = n0 + 3 * n1
    c_out = (n0 + 3 * n1) if overlap_out else (n0 + 10 * n1)
    chosen = 128
    for tile in (2048, 1024, 512, 256, 128):
        # 2 buffers per operand (double-buffering) x (two inputs + outputs) rows.
        if 2 * (2 * c_in + c_out) * tile * itemsize <= _VMEM_TILE_BUDGET:
            chosen = tile
            break
    # Don't over-tile tiny N; keep a multiple of 128 so lanes stay full/aligned.
    return max(128, min(chosen, pl.cdiv(N, 128) * 128))


# ---------------------------------------------------------------------------
# Wrapper (layout plumbing + pallas_call)
# ---------------------------------------------------------------------------
def levi_civita_coupler(x1, x2, metadata, overlap_out=True, tile_n=None):
    """Pallas implementation of LeviCivitaCoupler.forward for (N, C) tensors.

    x1, x2: (N, C) with C = n0 + 3*n1, l=1 block stored m-major (matches torch
    narrow(...).unflatten(dim, (3, n1))).  metadata = (n0, n1).
    """
    n0, n1 = int(metadata[0]), int(metadata[1])
    N, C = x1.shape
    assert x2.shape == x1.shape
    assert C == n0 + 3 * n1, "rep dim must be n0 + 3*n1"
    assert 1 <= n1 <= n0, "reference implicitly requires 1 <= metadata[1] <= metadata[0]"
    dtype = x1.dtype
    itemsize = jnp.dtype(dtype).itemsize

    if tile_n is None:
        tile_n = _pick_tile_n(n0, n1, N, itemsize, overlap_out)
    n_pad = pl.cdiv(N, tile_n) * tile_n

    # --- wrapper-side layout plumbing: channel-major so N maps to lanes ------
    # One transpose per input; the l0/l1 splits are cheap slices/reshapes of it.
    def to_channel_major(x):
        xt = x.T                                            # (C, N)
        if n_pad != N:
            xt = jnp.pad(xt, ((0, 0), (0, n_pad - N)))
        return xt[:n0], xt[n0:].reshape(3, n1, n_pad)       # (n0, Np), (3, n1, Np)

    x1_l0, x1_l1 = to_channel_major(x1)
    x2_l0, x2_l1 = to_channel_major(x2)

    grid = (n_pad // tile_n,)
    in_specs = [
        pl.BlockSpec((n0, tile_n), lambda i: (0, i)),
        pl.BlockSpec((3, n1, tile_n), lambda i: (0, 0, i)),
        pl.BlockSpec((n0, tile_n), lambda i: (0, i)),
        pl.BlockSpec((3, n1, tile_n), lambda i: (0, 0, i)),
    ]
    compiler_params = pltpu.CompilerParams(
        dimension_semantics=("parallel",),       # v7x: shard row-tiles across both TCs
        vmem_limit_bytes=_VMEM_LIMIT_BYTES,
    )
    args = (x1_l0, x1_l1, x2_l0, x2_l1)

    if overlap_out:
        out_l0_t, out_l1_t = pl.pallas_call(
            functools.partial(_levi_civita_overlap_kernel_t, n1),
            grid=grid,
            in_specs=in_specs,
            out_specs=(
                pl.BlockSpec((n0, tile_n), lambda i: (0, i)),
                pl.BlockSpec((3, n1, tile_n), lambda i: (0, 0, i)),
            ),
            out_shape=(
                jax.ShapeDtypeStruct((n0, n_pad), dtype),
                jax.ShapeDtypeStruct((3, n1, n_pad), dtype),
            ),
            compiler_params=compiler_params,
        )(*args)
        # Single channel-major concat + single transpose back to (N, C).
        out_t = jnp.concatenate(
            [out_l0_t, out_l1_t.reshape(3 * n1, n_pad)], axis=0
        )
        return out_t[:, :N].T
    else:
        out_000_t, out_110_t, out_l1_t = pl.pallas_call(
            functools.partial(_levi_civita_split_kernel_t, n1),
            grid=grid,
            in_specs=in_specs,
            out_specs=(
                pl.BlockSpec((n0, tile_n), lambda i: (0, i)),
                pl.BlockSpec((n1, tile_n), lambda i: (0, i)),
                pl.BlockSpec((3, 3, n1, tile_n), lambda i: (0, 0, 0, i)),
            ),
            out_shape=(
                jax.ShapeDtypeStruct((n0, n_pad), dtype),
                jax.ShapeDtypeStruct((n1, n_pad), dtype),
                jax.ShapeDtypeStruct((3, 3, n1, n_pad), dtype),
            ),
            compiler_params=compiler_params,
        )(*args)
        out_t = jnp.concatenate(
            [out_000_t, out_110_t, out_l1_t.reshape(9 * n1, n_pad)], axis=0
        )
        return out_t[:, :N].T


# ---------------------------------------------------------------------------
# Pure-JAX reference (mirrors the torch code literally) for verification
# ---------------------------------------------------------------------------
def levi_civita_ref(x1, x2, n0, n1, overlap_out=True):
    a1 = x1[:, n0:].reshape(-1, 3, n1)
    a2 = x2[:, n0:].reshape(-1, 3, n1)
    out_000 = x1[:, :n0] * x2[:, :n0]
    out_011 = x1[:, :n1][:, None, :] * a2
    out_101 = x2[:, :n1][:, None, :] * a1
    out_110 = (a1 * a2).sum(axis=1)
    out_111 = jnp.cross(a1, a2, axis=1)
    if overlap_out:
        out_l0 = out_000  # `.add(out_110)` result discarded in the reference code
        out_l1 = (out_111 + out_101 + out_011).reshape(-1, 3 * n1)
        return jnp.concatenate([out_l0, out_l1], axis=1)
    else:
        out_l0 = jnp.concatenate([out_000, out_110], axis=1)
        out_l1 = jnp.concatenate([out_101, out_011, out_111], axis=2).reshape(-1, 9 * n1)
        return jnp.concatenate([out_l0, out_l1], axis=1)


if __name__ == "__main__":
    key = jax.random.PRNGKey(0)

    # Config A: metadata = [4, 4], N = 8        -> tiny, single tile.
    # Config B: metadata = [8, 5], N = 130      -> ragged N (padding path).
    # Config C: metadata = [8, 5], N = 300, tile_n=128 -> multi-tile grid (3,).
    configs = [(8, 4, 4, None), (130, 8, 5, None), (300, 8, 5, 128)]
    for N, n0, n1, tn in configs:
        C = n0 + 3 * n1
        key, k1, k2 = jax.random.split(key, 3)
        x1 = jax.random.normal(k1, (N, C), dtype=jnp.float32)
        x2 = jax.random.normal(k2, (N, C), dtype=jnp.float32)

        # overlap_out=True (default torch path)
        out = jax.block_until_ready(
            levi_civita_coupler(x1, x2, (n0, n1), overlap_out=True, tile_n=tn)
        )
        ref = levi_civita_ref(x1, x2, n0, n1, overlap_out=True)
        assert out.shape == (N, n0 + 3 * n1)
        assert jnp.allclose(out, ref, atol=1e-5, rtol=1e-5)

        # overlap_out=False path
        out2 = jax.block_until_ready(
            levi_civita_coupler(x1, x2, (n0, n1), overlap_out=False, tile_n=tn)
        )
        ref2 = levi_civita_ref(x1, x2, n0, n1, overlap_out=False)
        assert out2.shape == (N, n0 + n1 + 9 * n1)
        assert jnp.allclose(out2, ref2, atol=1e-5, rtol=1e-5)

    print("KERNEL_OK")
</pallas_src>

<mosaic_0001>
module attributes {stable_mosaic.version = 11 : i64} {
  func.func @_levi_civita_overlap_kernel_t(%arg0: i32, %arg1: memref<4x128xf32, #tpu.memory_space<vmem>>, %arg2: memref<3x4x128xf32, #tpu.memory_space<vmem>>, %arg3: memref<4x128xf32, #tpu.memory_space<vmem>>, %arg4: memref<3x4x128xf32, #tpu.memory_space<vmem>>, %arg5: memref<4x128xf32, #tpu.memory_space<vmem>>, %arg6: memref<3x4x128xf32, #tpu.memory_space<vmem>>) attributes {dimension_semantics = [#tpu.dimension_semantics<parallel>], iteration_bounds = array<i64: 1>, scalar_prefetch = 0 : i64, scratch_operands = 0 : i64, tpu.core_type = #tpu.core_type<tc>, window_params = [{transform_indices = @transform_0, window_bounds = array<i64: 4, 128>}, {transform_indices = @transform_1, window_bounds = array<i64: 3, 4, 128>}, {transform_indices = @transform_2, window_bounds = array<i64: 4, 128>}, {transform_indices = @transform_3, window_bounds = array<i64: 3, 4, 128>}, {transform_indices = @transform_4, window_bounds = array<i64: 4, 128>}, {transform_indices = @transform_5, window_bounds = array<i64: 3, 4, 128>}]} {
    %c0 = arith.constant 0 : index
    %c0_0 = arith.constant 0 : index
    %0 = vector.load %arg1[%c0, %c0_0] : memref<4x128xf32, #tpu.memory_space<vmem>>, vector<4x128xf32>
    %c0_1 = arith.constant 0 : index
    %c0_2 = arith.constant 0 : index
    %1 = vector.load %arg3[%c0_1, %c0_2] : memref<4x128xf32, #tpu.memory_space<vmem>>, vector<4x128xf32>
    %2 = arith.mulf %0, %1 : vector<4x128xf32>
    %c0_3 = arith.constant 0 : index
    %c0_4 = arith.constant 0 : index
    %3 = vector.load %arg5[%c0_3, %c0_4] : memref<4x128xf32, #tpu.memory_space<vmem>>, vector<4x128xf32>
    tpu.vector_store %arg5[%c0_3, %c0_4], %2 {strides = array<i32>} : memref<4x128xf32, #tpu.memory_space<vmem>>, vector<4x128xf32>,
    %c0_5 = arith.constant 0 : index
    %c0_6 = arith.constant 0 : index
    %4 = vector.load %arg1[%c0_5, %c0_6] : memref<4x128xf32, #tpu.memory_space<vmem>>, vector<4x128xf32>
    %c0_7 = arith.constant 0 : index
    %c0_8 = arith.constant 0 : index
    %5 = vector.load %arg3[%c0_7, %c0_8] : memref<4x128xf32, #tpu.memory_space<vmem>>, vector<4x128xf32>
    %c0_9 = arith.constant 0 : index
    %c0_10 = arith.constant 0 : index
    %c0_11 = arith.constant 0 : index
    %6 = vector.load %arg2[%c0_9, %c0_10, %c0_11] : memref<3x4x128xf32, #tpu.memory_space<vmem>>, vector<1x4x128xf32>
    %7 = vector.shape_cast %6 : vector<1x4x128xf32> to vector<4x128xf32>
    %c1 = arith.constant 1 : index
    %c0_12 = arith.constant 0 : index
    %c0_13 = arith.constant 0 : index
    %8 = vector.load %arg2[%c1, %c0_12, %c0_13] : memref<3x4x128xf32, #tpu.memory_space<vmem>>, vector<1x4x128xf32>
    %9 = vector.shape_cast %8 : vector<1x4x128xf32> to vector<4x128xf32>
    %c2 = arith.constant 2 : index
    %c0_14 = arith.constant 0 : index
    %c0_15 = arith.constant 0 : index
    %10 = vector.load %arg2[%c2, %c0_14, %c0_15] : memref<3x4x128xf32, #tpu.memory_space<vmem>>, vector<1x4x128xf32>
    %11 = vector.shape_cast %10 : vector<1x4x128xf32> to vector<4x128xf32>
    %c0_16 = arith.constant 0 : index
    %c0_17 = arith.constant 0 : index
    %c0_18 = arith.constant 0 : index
    %12 = vector.load %arg4[%c0_16, %c0_17, %c0_18] : memref<3x4x128xf32, #tpu.memory_space<vmem>>, vector<1x4x128xf32>
    %13 = vector.shape_cast %12 : vector<1x4x128xf32> to vector<4x128xf32>
    %c1_19 = arith.constant 1 : index
    %c0_20 = arith.constant 0 : index
    %c0_21 = arith.constant 0 : index
    %14 = vector.load %arg4[%c1_19, %c0_20, %c0_21] : memref<3x4x128xf32, #tpu.memory_space<vmem>>, vector<1x4x128xf32>
    %15 = vector.shape_cast %14 : vector<1x4x128xf32> to vector<4x128xf32>
    %c2_22 = arith.constant 2 : index
    %c0_23 = arith.constant 0 : index
    %c0_24 = arith.constant 0 : index
    %16 = vector.load %arg4[%c2_22, %c0_23, %c0_24] : memref<3x4x128xf32, #tpu.memory_space<vmem>>, vector<1x4x128xf32>
    %17 = vector.shape_cast %16 : vector<1x4x128xf32> to vector<4x128xf32>
    %18 = arith.mulf %9, %17 : vector<4x128xf32>
    %19 = arith.mulf %11, %15 : vector<4x128xf32>
    %20 = arith.subf %18, %19 : vector<4x128xf32>
    %21 = arith.mulf %5, %7 : vector<4x128xf32>
    %22 = arith.addf %20, %21 : vector<4x128xf32>
    %23 = arith.mulf %4, %13 : vector<4x128xf32>
    %24 = arith.addf %22, %23 : vector<4x128xf32>
    %c0_25 = arith.constant 0 : index
    %c0_26 = arith.constant 0 : index
    %c0_27 = arith.constant 0 : index
    %25 = vector.load %arg6[%c0_25, %c0_26, %c0_27] : memref<3x4x128xf32, #tpu.memory_space<vmem>>, vector<1x4x128xf32>
    %26 = vector.shape_cast %25 : vector<1x4x128xf32> to vector<4x128xf32>
    %27 = vector.shape_cast %24 : vector<4x128xf32> to vector<1x4x128xf32>
    tpu.vector_store %arg6[%c0_25, %c0_26, %c0_27], %27 {strides = array<i32>} : memref<3x4x128xf32, #tpu.memory_space<vmem>>, vector<1x4x128xf32>,
    %28 = arith.mulf %11, %13 : vector<4x128xf32>
    %29 = arith.mulf %7, %17 : vector<4x128xf32>
    %30 = arith.subf %28, %29 : vector<4x128xf32>
    %31 = arith.mulf %5, %9 : vector<4x128xf32>
    %32 = arith.addf %30, %31 : vector<4x128xf32>
    %33 = arith.mulf %4, %15 : vector<4x128xf32>
    %34 = arith.addf %32, %33 : vector<4x128xf32>
    %c1_28 = arith.constant 1 : index
    %c0_29 = arith.constant 0 : index
    %c0_30 = arith.constant 0 : index
    %35 = vector.load %arg6[%c1_28, %c0_29, %c0_30] : memref<3x4x128xf32, #tpu.memory_space<vmem>>, vector<1x4x128xf32>
    %36 = vector.shape_cast %35 : vector<1x4x128xf32> to vector<4x128xf32>
    %37 = vector.shape_cast %34 : vector<4x128xf32> to vector<1x4x128xf32>
    tpu.vector_store %arg6[%c1_28, %c0_29, %c0_30], %37 {strides = array<i32>} : memref<3x4x128xf32, #tpu.memory_space<vmem>>, vector<1x4x128xf32>,
    %38 = arith.mulf %7, %15 : vector<4x128xf32>
    %39 = arith.mulf %9, %13 : vector<4x128xf32>
    %40 = arith.subf %38, %39 : vector<4x128xf32>
    %41 = arith.mulf %5, %11 : vector<4x128xf32>
    %42 = arith.addf %40, %41 : vector<4x128xf32>
    %43 = arith.mulf %4, %17 : vector<4x128xf32>
    %44 = arith.addf %42, %43 : vector<4x128xf32>
    %c2_31 = arith.constant 2 : index
    %c0_32 = arith.constant 0 : index
    %c0_33 = arith.constant 0 : index
    %45 = vector.load %arg6[%c2_31, %c0_32, %c0_33] : memref<3x4x128xf32, #tpu.memory_space<vmem>>, vector<1x4x128xf32>
    %46 = vector.shape_cast %45 : vector<1x4x128xf32> to vector<4x128xf32>
    %47 = vector.shape_cast %44 : vector<4x128xf32> to vector<1x4x128xf32>
    tpu.vector_store %arg6[%c2_31, %c0_32, %c0_33], %47 {strides = array<i32>} : memref<3x4x128xf32, #tpu.memory_space<vmem>>, vector<1x4x128xf32>,
    return
  }
  func.func @transform_0(%arg0: i32) -> (i32, i32) {
    %c0_i32 = arith.constant 0 : i32
    %c0_i32_0 = arith.constant 0 : i32
    return %c0_i32, %arg0 : i32, i32
  }
  func.func @transform_1(%arg0: i32) -> (i32, i32, i32) {
    %c0_i32 = arith.constant 0 : i32
    %c0_i32_0 = arith.constant 0 : i32
    %c0_i32_1 = arith.constant 0 : i32
    return %c0_i32, %c0_i32_0, %arg0 : i32, i32, i32
  }
  func.func @transform_2(%arg0: i32) -> (i32, i32) {
    %c0_i32 = arith.constant 0 : i32
    %c0_i32_0 = arith.constant 0 : i32
    return %c0_i32, %arg0 : i32, i32
  }
  func.func @transform_3(%arg0: i32) -> (i32, i32, i32) {
    %c0_i32 = arith.constant 0 : i32
    %c0_i32_0 = arith.constant 0 : i32
    %c0_i32_1 = arith.constant 0 : i32
    return %c0_i32, %c0_i32_0, %arg0 : i32, i32, i32
  }
  func.func @transform_4(%arg0: i32) -> (i32, i32) {
    %c0_i32 = arith.constant 0 : i32
    %c0_i32_0 = arith.constant 0 : i32
    return %c0_i32, %arg0 : i32, i32
  }
  func.func @transform_5(%arg0: i32) -> (i32, i32, i32) {
    %c0_i32 = arith.constant 0 : i32
    %c0_i32_0 = arith.constant 0 : i32
    %c0_i32_1 = arith.constant 0 : i32
    return %c0_i32, %c0_i32_0, %arg0 : i32, i32, i32
  }
}

</mosaic_0001>

<bundles_post_ra>
// kernel: tpu_custom_call.1
= control target key start
LH: loop header
LB: loop body
LE: loop exit
PB: predicated region body
PF: predicated region fallthrough
CT: control target
= control target key end

     0   :  { %11 = vsyncpa [#allocation3], 0  ;;  %s350_s0 = inlined_call_operand.hbm [shape: f32[4,128], index: 0, kind: input, shape index: {}]   ;;  %s351_s1 = inlined_call_operand.hbm [shape: f32[3,4,128], index: 1, kind: input, shape index: {}]   ;;  %s352_s2 = inlined_call_operand.hbm [shape: f32[4,128], index: 2, kind: input, shape index: {}]   ;;  %s353_s3 = inlined_call_operand.hbm [shape: f32[3,4,128], index: 3, kind: input, shape index: {}]   ;;  %s354_s4 = inlined_call_operand.hbm [shape: f32[4,128], index: 4, kind: output, shape index: {0}]   ;;  %s355_s5 = inlined_call_operand.hbm [shape: f32[3,4,128], index: 5, kind: output, shape index: {1}]  }
   0x1   :  { %12 = vsyncpa [#allocation6], 0 }
   0x2   :  { %13 = vsyncpa [#allocation9], 0 }
   0x3   :  { %14 = vsyncpa [#allocation4], 0 }
   0x4   :  { %15 = vsyncpa [#allocation12], 0  ;;  %s285_s18 = smov [#allocation5]  }
   0x5   :  { %s31_s19 = sshll.u32 %s285_s18, 4  ;;  %s32_s19 = int_to_ptr.vmem [resolvable:$true] %s31_s19 }
   0x6   :  { %s163_s20 = scalar_lea.vmem %s32_s19, 192  ;;  %p168_p1 = scmp.lt.s32.totalorder %s32_s19, %s32_s19 }
   0x7   :  { %p164_p0 = scmp.ne.s32.totalorder %s32_s19, %s163_s20  ;;  %p169_p2 = scmp.lt.s32.totalorder %s163_s20, %s163_s20 }
   0x9   :  { %p170_p3 = por %p169_p2, %p168_p1 }
   0xb   :  { %p171_p4 = pnand %p170_p3, %p164_p0 }
   0xd   :  { %174 = shalt.err (!%p171_p4)
}
   0xe   :  { %s286_s21 = smov 64   ;;  %s287_s22 = smov 4  }
   0xf   :  { %37 = dma.hbm_to_vmem [thread:$0]  %s351_s1, 192, %s32_s19, [#allocation6], %s286_s21, %s286_s21, %s287_s22  }
  0x10   :  { %s288_s25 = smov [#allocation2]   ;;  %s289_s27 = smov [#allocation7]  }
  0x11   :  { %s22_s26 = sshll.u32 %s288_s25, 4  ;;  %s44_s28 = sshll.u32 %s289_s27, 4  ;;  %s23_s26 = int_to_ptr.vmem [resolvable:$true] %s22_s26  ;;  %s45_s28 = int_to_ptr.vmem [resolvable:$true] %s44_s28 }
  0x12   :  { %s183_s29 = scalar_lea.vmem %s23_s26, 64  ;;  %p188_p6 = scmp.lt.s32.totalorder %s23_s26, %s23_s26 }
  0x13   :  { %p184_p5 = scmp.ne.s32.totalorder %s23_s26, %s183_s29  ;;  %p189_p7 = scmp.lt.s32.totalorder %s183_s29, %s183_s29 }
  0x15   :  { %p190_p8 = por %p189_p7, %p188_p6 }
  0x17   :  { %p191_p9 = pnand %p190_p8, %p184_p5 }
  0x19   :  { %194 = shalt.err (!%p191_p9)
}
  0x1a   :  { %25 = dma.hbm_to_vmem [thread:$0]  %s350_s0, 64, %s23_s26, [#allocation3]  }
  0x1b   :  { %s203_s7 = scalar_lea.vmem %s45_s28, 64  ;;  %p208_p11 = scmp.lt.s32.totalorder %s45_s28, %s45_s28 }
  0x1c   :  { %p204_p10 = scmp.ne.s32.totalorder %s45_s28, %s203_s7  ;;  %p209_p12 = scmp.lt.s32.totalorder %s203_s7, %s203_s7 }
  0x1e   :  { %p210_p13 = por %p209_p12, %p208_p11 }
  0x20   :  { %p211_p0 = pnand %p210_p13, %p204_p10 }
  0x22   :  { %214 = shalt.err (!%p211_p0)
}
  0x23   :  { %47 = dma.hbm_to_vmem [thread:$0]  %s352_s2, 64, %s45_s28, [#allocation6]  }
  0x24   :  { %s290_s9 = smov [#allocation8]  }
  0x25   :  { %s53_s10 = sshll.u32 %s290_s9, 4  ;;  %s54_s10 = int_to_ptr.vmem [resolvable:$true] %s53_s10 }
  0x26   :  { %s223_s11 = scalar_lea.vmem %s54_s10, 192  ;;  %p228_p2 = scmp.lt.s32.totalorder %s54_s10, %s54_s10 }
  0x27   :  { %p224_p1 = scmp.ne.s32.totalorder %s54_s10, %s223_s11  ;;  %p229_p3 = scmp.lt.s32.totalorder %s223_s11, %s223_s11 }
  0x29   :  { %p230_p4 = por %p229_p3, %p228_p2 }
  0x2b   :  { %p231_p5 = pnand %p230_p4, %p224_p1 }
  0x2d   :  { %234 = shalt.err (!%p231_p5)
}
  0x2e   :  { %59 = dma.hbm_to_vmem [thread:$0]  %s353_s3, 192, %s54_s10, [#allocation9], %s286_s21, %s286_s21, %s287_s22  }
  0x2f   :  { %275 = dma.done.wait [#allocation3], 64  }
  0x30   :  { %276 = vsyncadd [#allocation3], 4294967232 }
  0x31   :  { %277 = dma.done.wait [#allocation6], 256  }
  0x32   :  { %278 = vsyncadd [#allocation6], 4294967040 }
  0x33   :  { %279 = dma.done.wait [#allocation9], 192  }
  0x34   :  { %280 = vsyncadd [#allocation9], 4294967104  ;;  %s291_s2 = smov [#allocation10]   ;;  %v72_v0 = vld [vmem:[#allocation2] sm:$0xf] }
  0x35   :  { %s120_s13 = sshll.u32 %s291_s2, 4  ;;  %v73_v1 = vld [vmem:[#allocation7] sm:$0xf]  ;;  %v76_v2 = vld [vmem:[#allocation2] sm:$0xf]  ;;  %s121_s13 = int_to_ptr.vmem [resolvable:$true] %s120_s13 }
  0x36   :  { %v74_v3 = vmul.f32 %v73_v1, %v72_v0  ;;  %v77_v4 = vld [vmem:[#allocation7] sm:$0xf]  ;;  %v78_v5 = vld [vmem:[#allocation5] sm:$0xf]  ;;  %v80_v6 = vld [vmem:[#allocation5 + $0x4] sm:$0xf]  ;;  %p240_p7 = scmp.lt.s32.totalorder %s121_s13, %s121_s13 }
  0x37   :  { %v82_v7 = vld [vmem:[#allocation5 + $0x8] sm:$0xf]  ;;  %v83_v8 = vld [vmem:[#allocation8] sm:$0xf]  ;;  %v85_v9 = vld [vmem:[#allocation8 + $0x4] sm:$0xf]  ;;  %v91_v12 = vmul.f32 %v78_v5, %v77_v4  ;;  %v99_v14 = vmul.f32 %v80_v6, %v77_v4 }
  0x38   :  { %75 = vst [vmem:[#allocation10] sm:$0xf] %v74_v3  ;;  %v87_v10 = vld [vmem:[#allocation8 + $0x8] sm:$0xf]  ;;  %v89_v11 = vmul.f32 %v85_v9, %v82_v7  ;;  %v96_v13 = vmul.f32 %v83_v8, %v82_v7  ;;  %v105_v17 = vmul.f32 %v85_v9, %v78_v5  ;;  %v106_v18 = vmul.f32 %v83_v8, %v80_v6  ;;  %s235_s3 = scalar_lea.vmem %s121_s13, 64 }
  0x39   :  { %v88_v15 = vmul.f32 %v87_v10, %v80_v6  ;;  %v97_v16 = vmul.f32 %v87_v10, %v78_v5  ;;  %p236_p6 = scmp.ne.s32.totalorder %s121_s13, %s235_s3  ;;  %p241_p8 = scmp.lt.s32.totalorder %s235_s3, %s235_s3 }
  0x3b   :  { %p242_p9 = por %p241_p8, %p240_p7 }
  0x3d   :  { %p243_p10 = pnand %p242_p9, %p236_p6 }
  0x3f   :  { %246 = shalt.err (!%p243_p10)
}
  0x40   :  { %123 = dma.vmem_to_hbm [thread:$0]  %s121_s13, 64, %s354_s4, [#allocation4]   ;;  %v93_v19 = vmul.f32 %v83_v8, %v76_v2  ;;  %v101_v20 = vmul.f32 %v85_v9, %v76_v2  ;;  %v108_v21 = vmul.f32 %v82_v7, %v77_v4  ;;  %v90_v22 = vsub.f32 %v88_v15, %v89_v11 }
  0x41   :  { %v98_v23 = vsub.f32 %v96_v13, %v97_v16  ;;  %v107_v24 = vsub.f32 %v105_v17, %v106_v18  ;;  %v110_v25 = vmul.f32 %v87_v10, %v76_v2  ;;  %s292_s16 = smov [#allocation11]  }
  0x42   :  { %s129_s17 = sshll.u32 %s292_s16, 4  ;;  %v92_v26 = vadd.f32 %v91_v12, %v90_v22  ;;  %s130_s17 = int_to_ptr.vmem [resolvable:$true] %s129_s17 }
  0x43   :  { %v100_v27 = vadd.f32 %v99_v14, %v98_v23  ;;  %v109_v28 = vadd.f32 %v108_v21, %v107_v24  ;;  %s255_s4 = scalar_lea.vmem %s130_s17, 192  ;;  %p260_p12 = scmp.lt.s32.totalorder %s130_s17, %s130_s17 }
  0x44   :  { %v94_v29 = vadd.f32 %v93_v19, %v92_v26  ;;  %p256_p11 = scmp.ne.s32.totalorder %s130_s17, %s255_s4  ;;  %p261_p13 = scmp.lt.s32.totalorder %s255_s4, %s255_s4 }
  0x45   :  { %v102_v30 = vadd.f32 %v101_v20, %v100_v27  ;;  %v111_v31 = vadd.f32 %v110_v25, %v109_v28 }
  0x46   :  { %95 = vst [vmem:[#allocation11] sm:$0xf] %v94_v29  ;;  %p262_p0 = por %p261_p13, %p260_p12 }
  0x47   :  { %104 = vst [vmem:[#allocation11 + $0x4] sm:$0xf] %v102_v30  ;;  %113 = vst [vmem:[#allocation11 + $0x8] sm:$0xf] %v111_v31 }
  0x48   :  { %p263_p1 = pnand %p262_p0, %p256_p11 }
  0x4a   :  { %266 = shalt.err (!%p263_p1)
}
  0x4b   :  { %135 = dma.vmem_to_hbm [thread:$0]  %s130_s17, 192, %s355_s5, [#allocation12], %s286_s21, %s286_s21, %s287_s22  }
  0x4c   :  { %281 = dma.done.wait [#allocation4], 64  }
  0x4d   :  { %282 = vsyncadd [#allocation4], 4294967232 }
  0x4e   :  { %283 = dma.done.wait [#allocation12], 192  }
  0x4f   :  { %284 = vsyncadd [#allocation12], 4294967104 }
  0x50   :  { %142 = vsyncpa [#allocation3], 1 }
  0x51   :  { %143 = vsyncpa [#allocation6], 1 }
  0x52   :  { %144 = vsyncpa [#allocation9], 1 }
  0x53   :  { %145 = vsyncpa [#allocation4], 1 }
  0x54   :  { %146 = vsyncpa [#allocation12], 1 }

</bundles_post_ra>
